<compile_context>
chip_gen: v7x
topology: tpu7x:2x2x1
jax: 0.10.0
libtpu: 0.0.40
codegen_flags: <defaults>
</compile_context>

<pallas_src>
import functools

import jax
import jax.numpy as jnp
from jax import lax
from jax.experimental import pallas as pl
from jax.experimental.pallas import tpu as pltpu


# ---------------------------------------------------------------------------
# Helpers
# ---------------------------------------------------------------------------
def _round_up(x, m):
    return (x + m - 1) // m * m


def _tpu_vmem_bytes():
    """Per-TensorCore VMEM capacity (generation-aware), with safe fallbacks."""
    try:
        cap = int(pltpu.get_tpu_info().vmem_capacity_bytes)
        if cap > 0:
            return cap
    except Exception:
        pass
    try:
        kind = jax.devices()[0].device_kind.lower()
        if "v7" in kind:
            return 64 << 20
    except Exception:
        pass
    return 128 << 20          # v5e / v6e


def _vmem_limit_bytes(estimate, capacity):
    """2x slack over the static estimate, capped at ~0.9 of physical VMEM."""
    hi = int(0.9 * capacity)
    return int(min(max(2 * estimate, 16 << 20), hi))


def _sublane_tile(itemsize):
    """Packed sublane tile: 8 for f32, 16 for bf16, 32 for int8."""
    return max(8, 32 // itemsize)


def _shared_tiles(M, nf_pad, Npad, itm, vmem_cap):
    """Pick (TM, TC, vmem_estimate) for the shared gated head.

    Bigger TM cuts wg HBM re-streaming; TC only trades VMEM footprint, so we
    search TM (descending) outer, TC (descending) inner, under a ~0.7x VMEM
    budget.  A TM that divides M is preferred (avoids a row-padding pass)."""
    budget = int(0.7 * vmem_cap)
    sub = _sublane_tile(itm)

    tm_cands = [t for t in (512, 256, 128) if t <= M]
    if not tm_cands:
        tm_cands = [_round_up(M, sub)]
    tc_cands = [t for t in (512, 256, 128) if nf_pad % t == 0]   # nf_pad % 128 == 0

    def est(tm, tc):
        return (2 * (tm * nf_pad            # resident x rows (double-buffered)
                     + nf_pad * tc          # wg column slab
                     + tc                   # bg slab
                     + tc * Npad            # w row slab
                     + Npad                 # b
                     + tm * Npad) * itm     # output tile
                + tm * Npad * 4)            # f32 accumulator scratch

    for prefer_divisor in (True, False):
        for tm in tm_cands:
            if prefer_divisor and M % tm != 0:
                continue
            for tc in tc_cands:
                e = est(tm, tc)
                if e <= budget:
                    return tm, tc, e
    tm, tc = tm_cands[-1], tc_cands[-1]
    return tm, tc, est(tm, tc)


# ---------------------------------------------------------------------------
# Kernel 1: shared head (individual=False), tiled gated projection.
#
# Grid = (M_pad // TM, nf_pad // TC); axis 0 "parallel", axis 1 "arbitrary".
#   xf_ref : [TM, nf_pad]  full rows (resident across j: block index (i, 0))
#   wg_ref : [nf_pad, TC]  gate weight column slab (streamed)
#   bg_ref : [1,  TC]      gate bias slab
#   w_ref  : [TC, Npad]    projection weight row slab (streamed)
#   b_ref  : [1,  Npad]    projection bias (resident)
#   o_ref  : [TM, Npad]    output rows (resident across j)
#   acc_ref: [TM, Npad]    f32 accumulator scratch
# ---------------------------------------------------------------------------
def gated_head_kernel(xf_ref, wg_ref, bg_ref, w_ref, b_ref, o_ref, acc_ref):
    j = pl.program_id(1)
    tc = wg_ref.shape[1]

    @pl.when(j == 0)
    def _():
        acc_ref[...] = jnp.zeros_like(acc_ref)

    # Gate for this column slab: g_j = x @ wg[:, j-block] + bg[j-block].
    # Operands in their native dtype; MXU accumulates in f32.
    g = jnp.dot(xf_ref[...], wg_ref[...], preferred_element_type=jnp.float32)
    g = g + bg_ref[...].astype(jnp.float32)

    # SiLU(g) = g / (1 + exp(-g)); exp + approx reciprocal both land on EUP.
    z = g * pl.reciprocal(1.0 + jnp.exp(-g), approx=True)

    # Gated activations for this slab: tile-aligned view of the resident row
    # block (tc is a multiple of 128 -> zero-cost slice, no second HBM read).
    col0 = pl.multiple_of(j * tc, 128)
    h = xf_ref[:, pl.ds(col0, tc)].astype(jnp.float32) * z

    # Second matmul in the weight dtype (bf16 weights stay bf16 on the MXU).
    acc_ref[...] += jnp.dot(h.astype(w_ref.dtype), w_ref[...],
                            preferred_element_type=jnp.float32)

    @pl.when(j == pl.num_programs(1) - 1)
    def _():
        o_ref[...] = (acc_ref[...] + b_ref[...].astype(jnp.float32)
                      ).astype(o_ref.dtype)


def flatten_head_shared(x, wg, bg, w, b):
    """individual=False branch.  x: [bs, n_vars, d, patch]."""
    bs, n_vars, d, p = x.shape
    nf = d * p
    d_model = w.shape[1]
    M = bs * n_vars
    itm = x.dtype.itemsize
    x2 = x.reshape(M, nf)                      # flatten(start_dim=-2) + fold batch

    nf_pad = _round_up(nf, 128)                # lane-aligned column slabs
    Npad = _round_up(d_model, 128)             # lane-dense output stores

    cap = _tpu_vmem_bytes()
    TM, TC, vmem_est = _shared_tiles(M, nf_pad, Npad, itm, cap)
    M_pad = _round_up(M, TM)

    # Zero padding.  Padded x columns are 0 and padded w rows are 0, so padded
    # gate columns contribute nothing to the accumulator (correctness holds).
    if nf_pad != nf:
        x2 = jnp.pad(x2, ((0, 0), (0, nf_pad - nf)))
        wg = jnp.pad(wg, ((0, nf_pad - nf), (0, nf_pad - nf)))
        bg = jnp.pad(bg, ((0, 0), (0, nf_pad - nf)))
        w = jnp.pad(w, ((0, nf_pad - nf), (0, 0)))
    if M_pad != M:                              # avoided whenever TM divides M
        x2 = jnp.pad(x2, ((0, M_pad - M), (0, 0)))
    if Npad != d_model:
        w = jnp.pad(w, ((0, 0), (0, Npad - d_model)))
        b = jnp.pad(b, ((0, 0), (0, Npad - d_model)))

    grid = (M_pad // TM, nf_pad // TC)          # reduction (column) axis last

    out = pl.pallas_call(
        gated_head_kernel,
        out_shape=jax.ShapeDtypeStruct((M_pad, Npad), x.dtype),
        grid_spec=pltpu.PrefetchScalarGridSpec(
            num_scalar_prefetch=0,
            grid=grid,
            in_specs=[
                pl.BlockSpec((TM, nf_pad), lambda i, j: (i, 0)),   # x rows (resident over j)
                pl.BlockSpec((nf_pad, TC), lambda i, j: (0, j)),   # gate weight columns
                pl.BlockSpec((1, TC), lambda i, j: (0, j)),        # gate bias slab
                pl.BlockSpec((TC, Npad), lambda i, j: (j, 0)),     # proj weight rows
                pl.BlockSpec((1, Npad), lambda i, j: (0, 0)),      # proj bias (resident)
            ],
            out_specs=pl.BlockSpec((TM, Npad), lambda i, j: (i, 0)),
            scratch_shapes=[pltpu.VMEM((TM, Npad), jnp.float32)],
        ),
        compiler_params=pltpu.CompilerParams(
            dimension_semantics=("parallel", "arbitrary"),   # rows shard across TCs
            vmem_limit_bytes=_vmem_limit_bytes(vmem_est, cap)),
    )(x2, wg, bg, w, b)

    return out[:M, :d_model].reshape(bs, n_vars, d_model)


# ---------------------------------------------------------------------------
# Kernel 2: individual=True branch — one Linear(nf, target_window) per var.
# Var axis leads everywhere; one batched dot_general per grid step.
#   x_ref : [VT, bs, nf]      VT vars' flattened features
#   w_ref : [VT, nf, TWp]     their (transposed, lane-padded) weights
#   b_ref : [VT, 1,  TWp]     their biases (per-step block, no dynamic index)
#   o_ref : [VT, bs, TWp]
# ---------------------------------------------------------------------------
def individual_head_kernel(x_ref, w_ref, b_ref, o_ref):
    y = lax.dot_general(
        x_ref[...], w_ref[...],
        dimension_numbers=(((2,), (1,)), ((0,), (0,))),     # batch over vars
        preferred_element_type=jnp.float32)                 # [VT, bs, TWp]
    o_ref[...] = (y + b_ref[...].astype(jnp.float32)).astype(o_ref.dtype)


def flatten_head_individual(x, wv, bv):
    """individual=True branch.  x: [bs, n_vars, d, patch]."""
    bs, n_vars, d, p = x.shape
    nf = d * p
    tw = wv.shape[2]
    itm = x.dtype.itemsize

    # Var axis leading -> all kernel accesses are on the leading (cheap) axis.
    x2 = jnp.transpose(x.reshape(bs, n_vars, nf), (1, 0, 2))   # [n_vars, bs, nf]
    TWp = _round_up(tw, 128)                                   # lane-dense output

    # Generation-aware per-step VMEM budget: this branch is HBM-bound on the
    # per-var weight stream, so bigger VT = bigger DMAs / fewer grid steps.
    cap = _tpu_vmem_bytes()
    budget = min(max(cap // 4, 8 << 20), 48 << 20)     # ~16 MiB v7x, ~32 MiB v5e/v6e
    per_var = 2 * (bs * nf + nf * TWp + TWp + bs * TWp) * itm   # double-buffered
    fit = max(1, budget // per_var)

    VT = min(n_vars, int(fit))
    if VT < n_vars:
        # Prefer a VT dividing n_vars (no var padding) if one is close to fit.
        for cand in range(VT, max(VT // 2, 1) - 1, -1):
            if n_vars % cand == 0:
                VT = cand
                break
    n_pad = _round_up(n_vars, VT)

    wv_p = wv
    bv_p = bv
    if TWp != tw or n_pad != n_vars:
        wv_p = jnp.pad(wv, ((0, n_pad - n_vars), (0, 0), (0, TWp - tw)))
        bv_p = jnp.pad(bv, ((0, n_pad - n_vars), (0, 0), (0, TWp - tw)))
    if n_pad != n_vars:
        x2 = jnp.pad(x2, ((0, n_pad - n_vars), (0, 0), (0, 0)))

    vmem_est = 2 * (VT * bs * nf + VT * nf * TWp + VT * TWp + VT * bs * TWp) * itm

    out = pl.pallas_call(
        individual_head_kernel,
        out_shape=jax.ShapeDtypeStruct((n_pad, bs, TWp), x.dtype),
        grid_spec=pltpu.PrefetchScalarGridSpec(
            num_scalar_prefetch=0,
            grid=(n_pad // VT,),
            in_specs=[
                pl.BlockSpec((VT, bs, nf), lambda v: (v, 0, 0)),    # VT vars' rows
                pl.BlockSpec((VT, nf, TWp), lambda v: (v, 0, 0)),   # their weights
                pl.BlockSpec((VT, 1, TWp), lambda v: (v, 0, 0)),    # their biases
            ],
            out_specs=pl.BlockSpec((VT, bs, TWp), lambda v: (v, 0, 0)),
        ),
        compiler_params=pltpu.CompilerParams(
            dimension_semantics=("parallel",),
            vmem_limit_bytes=_vmem_limit_bytes(vmem_est, cap)),
    )(x2, wv_p, bv_p)

    return jnp.transpose(out[:n_vars, :, :tw], (1, 0, 2))      # [bs, n_vars, tw]


# ---------------------------------------------------------------------------
# Deterministic parameter init (PyTorch nn.Linear default: U(-1/sqrt(in), +)).
# Weights are stored already transposed as [in, out].
# ---------------------------------------------------------------------------
def init_params(key, n_vars, nf, d_model, target_window):
    ks = jax.random.split(key, 6)
    lim = 1.0 / jnp.sqrt(nf)
    wg = jax.random.uniform(ks[0], (nf, nf), jnp.float32, -lim, lim)
    bg = jax.random.uniform(ks[1], (1, nf), jnp.float32, -lim, lim)
    w = jax.random.uniform(ks[2], (nf, d_model), jnp.float32, -lim, lim)
    b = jax.random.uniform(ks[3], (1, d_model), jnp.float32, -lim, lim)
    wv = jax.random.uniform(ks[4], (n_vars, nf, target_window), jnp.float32, -lim, lim)
    bv = jax.random.uniform(ks[5], (n_vars, 1, target_window), jnp.float32, -lim, lim)
    return wg, bg, w, b, wv, bv


def _ref_shared(x2, wg, bg, w, b):
    g = x2 @ wg + bg
    return (x2 * (g * jax.nn.sigmoid(g))) @ w + b


def _ref_individual(x2, wv, bv):
    return jnp.einsum("bvn,vnt->bvt", x2, wv) + jnp.transpose(bv, (1, 0, 2))


if __name__ == "__main__":
    k1x, k1p, k2x, k2p = jax.random.split(jax.random.PRNGKey(0), 4)

    # ------- Test 1: small shapes (exercises nf->128 padding, tiny-M path) ---
    bs, n_vars, d, patch = 2, 4, 8, 4           # nf = 32
    nf = d * patch
    d_model, target_window = 16, 12
    x = jax.random.normal(k1x, (bs, n_vars, d, patch), jnp.float32)
    wg, bg, w, b, wv, bv = init_params(k1p, n_vars, nf, d_model, target_window)
    x2 = x.reshape(bs, n_vars, nf)

    y_shared = jax.block_until_ready(flatten_head_shared(x, wg, bg, w, b))
    assert y_shared.shape == (bs, n_vars, d_model)
    assert jnp.allclose(y_shared, _ref_shared(x2, wg, bg, w, b),
                        atol=2e-2, rtol=2e-2)

    y_ind = jax.block_until_ready(flatten_head_individual(x, wv, bv))
    assert y_ind.shape == (bs, n_vars, target_window)
    assert jnp.allclose(y_ind, _ref_individual(x2, wv, bv), atol=5e-3, rtol=5e-3)

    # ------- Test 2: tiled path (TM | M, multi-step column accumulation) -----
    bs2, nv2, d2, p2 = 4, 32, 24, 16            # M = 128, nf = 384 -> 3 column steps
    nf2 = d2 * p2
    dm2, tw2 = 96, 40
    x_b = jax.random.normal(k2x, (bs2, nv2, d2, p2), jnp.float32)
    wg2, bg2, w2, b2, wv2, bv2 = init_params(k2p, nv2, nf2, dm2, tw2)
    xb2 = x_b.reshape(bs2, nv2, nf2)

    y2 = jax.block_until_ready(flatten_head_shared(x_b, wg2, bg2, w2, b2))
    assert y2.shape == (bs2, nv2, dm2)
    assert jnp.allclose(y2, _ref_shared(xb2, wg2, bg2, w2, b2),
                        atol=2e-2, rtol=2e-2)

    y2i = jax.block_until_ready(flatten_head_individual(x_b, wv2, bv2))
    assert y2i.shape == (bs2, nv2, tw2)
    assert jnp.allclose(y2i, _ref_individual(xb2, wv2, bv2), atol=5e-3, rtol=5e-3)

    print("KERNEL_OK")
</pallas_src>

<mosaic_0001>
module attributes {stable_mosaic.version = 11 : i64} {
  func.func @gated_head_kernel(%arg0: i32, %arg1: i32, %arg2: memref<8x128xf32, #tpu.memory_space<vmem>>, %arg3: memref<128x128xf32, #tpu.memory_space<vmem>>, %arg4: memref<1x128xf32, #tpu.memory_space<vmem>>, %arg5: memref<128x128xf32, #tpu.memory_space<vmem>>, %arg6: memref<1x128xf32, #tpu.memory_space<vmem>>, %arg7: memref<8x128xf32, #tpu.memory_space<vmem>>, %arg8: memref<8x128xf32, #tpu.memory_space<vmem>>) attributes {dimension_semantics = [#tpu.dimension_semantics<parallel>, #tpu.dimension_semantics<arbitrary>], iteration_bounds = array<i64: 1, 1>, scalar_prefetch = 0 : i64, scratch_operands = 1 : i64, tpu.core_type = #tpu.core_type<tc>, window_params = [{transform_indices = @transform_0, window_bounds = array<i64: 8, 128>}, {transform_indices = @transform_1, window_bounds = array<i64: 128, 128>}, {transform_indices = @transform_2, window_bounds = array<i64: 1, 128>}, {transform_indices = @transform_3, window_bounds = array<i64: 128, 128>}, {pipeline_mode = #tpu.pipeline_mode<synchronous>, transform_indices = @transform_4, window_bounds = array<i64: 1, 128>}, {transform_indices = @transform_5, window_bounds = array<i64: 8, 128>}]} {
    %c0_i32 = arith.constant 0 : i32
    %0 = arith.cmpi eq, %arg1, %c0_i32 : i32
    %1 = arith.extui %0 : i1 to i32
    %c0_i32_0 = arith.constant 0 : i32
    %2 = arith.cmpi ne, %1, %c0_i32_0 : i32
    scf.if %2 {
      %cst_18 = arith.constant 0.000000e+00 : f32
      %29 = vector.broadcast %cst_18 : f32 to vector<8x128xf32>
      %c0_19 = arith.constant 0 : index
      %c0_20 = arith.constant 0 : index
      %30 = vector.load %arg8[%c0_19, %c0_20] : memref<8x128xf32, #tpu.memory_space<vmem>>, vector<8x128xf32>
      tpu.vector_store %arg8[%c0_19, %c0_20], %29 {strides = array<i32>} : memref<8x128xf32, #tpu.memory_space<vmem>>, vector<8x128xf32>,
    } else {
    }
    %c0 = arith.constant 0 : index
    %c0_1 = arith.constant 0 : index
    %3 = vector.load %arg2[%c0, %c0_1] : memref<8x128xf32, #tpu.memory_space<vmem>>, vector<8x128xf32>
    %c0_2 = arith.constant 0 : index
    %c0_3 = arith.constant 0 : index
    %4 = vector.load %arg3[%c0_2, %c0_3] : memref<128x128xf32, #tpu.memory_space<vmem>>, vector<128x128xf32>
    %cst = arith.constant dense<0.000000e+00> : vector<8x128xf32>
    %5 = tpu.matmul %3, %4, %cst {dimension_numbers = #tpu.dot_dimension_numbers<[1], [0], [0], [1], [0, 0, 1, 1], [], []>} : vector<8x128xf32>, vector<128x128xf32>, vector<8x128xf32> -> vector<8x128xf32>
    %c0_4 = arith.constant 0 : index
    %c0_5 = arith.constant 0 : index
    %6 = vector.load %arg4[%c0_4, %c0_5] : memref<1x128xf32, #tpu.memory_space<vmem>>, vector<1x128xf32>
    %7 = vector.broadcast %6 : vector<1x128xf32> to vector<8x128xf32>
    %8 = arith.addf %5, %7 : vector<8x128xf32>
    %cst_6 = arith.constant 0.000000e+00 : f32
    %9 = vector.broadcast %cst_6 : f32 to vector<8x128xf32>
    %10 = arith.subf %9, %8 : vector<8x128xf32>
    %11 = math.exp %10 : vector<8x128xf32>
    %cst_7 = arith.constant 1.000000e+00 : f32
    %12 = vector.broadcast %cst_7 : f32 to vector<8x128xf32>
    %13 = arith.addf %12, %11 : vector<8x128xf32>
    %14 = tpu.reciprocal %13 {approx = true} : vector<8x128xf32> -> vector<8x128xf32>
    %15 = arith.mulf %8, %14 : vector<8x128xf32>
    %c128_i32 = arith.constant 128 : i32
    %16 = arith.muli %arg1, %c128_i32 : i32
    %17 = tpu.assume_multiple %16, 128 : i32
    %c0_8 = arith.constant 0 : index
    %18 = arith.index_cast %17 : i32 to index
    %19 = vector.load %arg2[%c0_8, %18] : memref<8x128xf32, #tpu.memory_space<vmem>>, vector<8x128xf32>
    %20 = arith.mulf %19, %15 : vector<8x128xf32>
    %c0_9 = arith.constant 0 : index
    %c0_10 = arith.constant 0 : index
    %21 = vector.load %arg8[%c0_9, %c0_10] : memref<8x128xf32, #tpu.memory_space<vmem>>, vector<8x128xf32>
    %c0_11 = arith.constant 0 : index
    %c0_12 = arith.constant 0 : index
    %22 = vector.load %arg5[%c0_11, %c0_12] : memref<128x128xf32, #tpu.memory_space<vmem>>, vector<128x128xf32>
    %cst_13 = arith.constant dense<0.000000e+00> : vector<8x128xf32>
    %23 = tpu.matmul %20, %22, %cst_13 {dimension_numbers = #tpu.dot_dimension_numbers<[1], [0], [0], [1], [0, 0, 1, 1], [], []>} : vector<8x128xf32>, vector<128x128xf32>, vector<8x128xf32> -> vector<8x128xf32>
    %24 = arith.addf %21, %23 : vector<8x128xf32>
    %c0_14 = arith.constant 0 : index
    %c0_15 = arith.constant 0 : index
    %25 = vector.load %arg8[%c0_14, %c0_15] : memref<8x128xf32, #tpu.memory_space<vmem>>, vector<8x128xf32>
    tpu.vector_store %arg8[%c0_14, %c0_15], %24 {strides = array<i32>} : memref<8x128xf32, #tpu.memory_space<vmem>>, vector<8x128xf32>,
    %c0_i32_16 = arith.constant 0 : i32
    %26 = arith.cmpi eq, %arg1, %c0_i32_16 : i32
    %27 = arith.extui %26 : i1 to i32
    %c0_i32_17 = arith.constant 0 : i32
    %28 = arith.cmpi ne, %27, %c0_i32_17 : i32
    scf.if %28 {
      %c0_18 = arith.constant 0 : index
      %c0_19 = arith.constant 0 : index
      %29 = vector.load %arg8[%c0_18, %c0_19] : memref<8x128xf32, #tpu.memory_space<vmem>>, vector<8x128xf32>
      %c0_20 = arith.constant 0 : index
      %c0_21 = arith.constant 0 : index
      %30 = vector.load %arg6[%c0_20, %c0_21] : memref<1x128xf32, #tpu.memory_space<vmem>>, vector<1x128xf32>
      %31 = vector.broadcast %30 : vector<1x128xf32> to vector<8x128xf32>
      %32 = arith.addf %29, %31 : vector<8x128xf32>
      %c0_22 = arith.constant 0 : index
      %c0_23 = arith.constant 0 : index
      %33 = vector.load %arg7[%c0_22, %c0_23] : memref<8x128xf32, #tpu.memory_space<vmem>>, vector<8x128xf32>
      tpu.vector_store %arg7[%c0_22, %c0_23], %32 {strides = array<i32>} : memref<8x128xf32, #tpu.memory_space<vmem>>, vector<8x128xf32>,
    } else {
    }
    return
  }
  func.func @transform_0(%arg0: i32, %arg1: i32) -> (i32, i32) {
    %c0_i32 = arith.constant 0 : i32
    %c0_i32_0 = arith.constant 0 : i32
    return %arg0, %c0_i32 : i32, i32
  }
  func.func @transform_1(%arg0: i32, %arg1: i32) -> (i32, i32) {
    %c0_i32 = arith.constant 0 : i32
    %c0_i32_0 = arith.constant 0 : i32
    return %c0_i32, %arg1 : i32, i32
  }
  func.func @transform_2(%arg0: i32, %arg1: i32) -> (i32, i32) {
    %c0_i32 = arith.constant 0 : i32
    %c0_i32_0 = arith.constant 0 : i32
    return %c0_i32, %arg1 : i32, i32
  }
  func.func @transform_3(%arg0: i32, %arg1: i32) -> (i32, i32) {
    %c0_i32 = arith.constant 0 : i32
    %c0_i32_0 = arith.constant 0 : i32
    return %arg1, %c0_i32 : i32, i32
  }
  func.func @transform_4(%arg0: i32, %arg1: i32) -> (i32, i32) {
    %c0_i32 = arith.constant 0 : i32
    %c0_i32_0 = arith.constant 0 : i32
    %c0_i32_1 = arith.constant 0 : i32
    return %c0_i32, %c0_i32_0 : i32, i32
  }
  func.func @transform_5(%arg0: i32, %arg1: i32) -> (i32, i32) {
    %c0_i32 = arith.constant 0 : i32
    %c0_i32_0 = arith.constant 0 : i32
    return %arg0, %c0_i32 : i32, i32
  }
}

</mosaic_0001>

<bundles_post_ra>
// kernel: tpu_custom_call.1
= control target key start
LH: loop header
LB: loop body
LE: loop exit
PB: predicated region body
PF: predicated region fallthrough
CT: control target
= control target key end

     0   :  { %10 = vsyncpa [#allocation4], 0  ;;  %s666_s0 = inlined_call_operand.hbm [shape: f32[8,128], index: 0, kind: input, shape index: {}]   ;;  %s667_s1 = inlined_call_operand.hbm [shape: f32[128,128], index: 1, kind: input, shape index: {}]   ;;  %s668_s2 = inlined_call_operand.vmem [shape: f32[1,128], index: 2, kind: input, shape index: {}]   ;;  %s669_s3 = inlined_call_operand.hbm [shape: f32[128,128], index: 3, kind: input, shape index: {}]   ;;  %s670_s4 = inlined_call_operand.vmem [shape: f32[1,128], index: 4, kind: input, shape index: {}]   ;;  %s671_s5 = inlined_call_operand.hbm [shape: f32[8,128], index: 5, kind: output, shape index: {}]  }
   0x1   :  { %11 = vsyncpa [#allocation7], 0 }
   0x2   :  { %12 = vsyncpa [#allocation5], 0  ;;  %s551_s18 = smov [#allocation6]   ;;  %s457_s22 = scalar_lea.hbm %s667_s1, 2048 }
   0x3   :  { %s28_s19 = sshll.u32 %s551_s18, 4  ;;  %p458_p0 = scmp.ne.s32.totalorder %s667_s1, %s457_s22  ;;  %s29_s19 = int_to_ptr.vmem [resolvable:$true] %s28_s19 }
   0x4   :  { %p461_p1 = scmp.lt.u32.totalorder %s457_s22, %s667_s1 }
   0x6   :  { %p463_p2 = pnand %p461_p1, %p458_p0 }
   0x8   :  { %466 = shalt.err (!%p463_p2)
}
   0x9   :  { %s467_s27 = scalar_lea.vmem %s29_s19, 2048  ;;  %p472_p4 = scmp.lt.s32.totalorder %s29_s19, %s29_s19 }
   0xa   :  { %p468_p3 = scmp.ne.s32.totalorder %s29_s19, %s467_s27  ;;  %p473_p5 = scmp.lt.s32.totalorder %s467_s27, %s467_s27 }
   0xc   :  { %p474_p6 = por %p473_p5, %p472_p4 }
   0xe   :  { %p475_p7 = pnand %p474_p6, %p468_p3 }
  0x10   :  { %478 = shalt.err (!%p475_p7)
}
  0x11   :  { %s552_s28 = smov 128   ;;  %s553_s29 = smov 8  }
  0x12   :  { %34 = dma.hbm_to_vmem [thread:$0]  %s667_s1, 2048, %s29_s19, [#allocation7], %s552_s28, %s552_s28, %s553_s29  }
  0x13   :  { %s554_s7 = smov [#allocation3]   ;;  %s555_s9 = smov [#allocation8]  }
  0x14   :  { %s19_s8 = sshll.u32 %s554_s7, 4  ;;  %s42_s10 = sshll.u32 %s555_s9, 4  ;;  %s20_s8 = int_to_ptr.vmem [resolvable:$true] %s19_s8  ;;  %s43_s10 = int_to_ptr.vmem [resolvable:$true] %s42_s10 }
  0x15   :  { %s479_s13 = scalar_lea.hbm %s666_s0, 128 }
  0x16   :  { %p480_p8 = scmp.ne.s32.totalorder %s666_s0, %s479_s13  ;;  %p483_p9 = scmp.lt.u32.totalorder %s479_s13, %s666_s0 }
  0x18   :  { %p485_p10 = pnand %p483_p9, %p480_p8 }
  0x1a   :  { %488 = shalt.err (!%p485_p10)
}
  0x1b   :  { %s489_s1 = scalar_lea.vmem %s20_s8, 128  ;;  %p494_p12 = scmp.lt.s32.totalorder %s20_s8, %s20_s8 }
  0x1c   :  { %p490_p11 = scmp.ne.s32.totalorder %s20_s8, %s489_s1  ;;  %p495_p13 = scmp.lt.s32.totalorder %s489_s1, %s489_s1 }
  0x1e   :  { %p496_p0 = por %p495_p13, %p494_p12 }
  0x20   :  { %p497_p1 = pnand %p496_p0, %p490_p11 }
  0x22   :  { %500 = shalt.err (!%p497_p1)
}
  0x23   :  { %22 = dma.hbm_to_vmem [thread:$0]  %s666_s0, 128, %s20_s8, [#allocation4]  }
  0x24   :  { %s501_s22 = scalar_lea.hbm %s669_s3, 2048 }
  0x25   :  { %p502_p2 = scmp.ne.s32.totalorder %s669_s3, %s501_s22  ;;  %p505_p3 = scmp.lt.u32.totalorder %s501_s22, %s669_s3 }
  0x27   :  { %p507_p4 = pnand %p505_p3, %p502_p2 }
  0x29   :  { %510 = shalt.err (!%p507_p4)
}
  0x2a   :  { %s511_s27 = scalar_lea.vmem %s43_s10, 2048  ;;  %p516_p6 = scmp.lt.s32.totalorder %s43_s10, %s43_s10 }
  0x2b   :  { %p512_p5 = scmp.ne.s32.totalorder %s43_s10, %s511_s27  ;;  %p517_p7 = scmp.lt.s32.totalorder %s511_s27, %s511_s27 }
  0x2d   :  { %p518_p8 = por %p517_p7, %p516_p6 }
  0x2f   :  { %p519_p9 = pnand %p518_p8, %p512_p5 }
  0x31   :  { %522 = shalt.err (!%p519_p9)
}
  0x32   :  { %48 = dma.hbm_to_vmem [thread:$0]  %s669_s3, 2048, %s43_s10, [#allocation7], %s552_s28, %s552_s28, %s553_s29  }
  0x33   :  { %545 = dma.done.wait [#allocation4], 128  }
  0x34   :  { %546 = vsyncadd [#allocation4], 4294967168 }
  0x35   :  { %547 = dma.done.wait [#allocation7], 4096  }
  0x36   :  { %548 = vsyncadd [#allocation7], 4294963200  ;;  %v556_v0 = vmov 0.0|0.0   ;;  %vm557_vm0 = vmmov 0   ;;  %v558_v1 = vmov 0.0   ;;  %v66_v2 = vld [vmem:[#allocation6] sm:$0xff] }
  0x37   :  { %396 = vmatprep.subr.bf16.mxu0 %v556_v0  ;;  %358 = vmatprep.mubr.msk.f32.mxu0 %vm557_vm0, %v558_v1  ;;  %v67_v3 = vld [vmem:[#allocation6 + $0x8] sm:$0xff]  ;;  %v68_v4 = vld [vmem:[#allocation6 + $0x10] sm:$0xff]  ;;  %v69_v6 = vld [vmem:[#allocation6 + $0x18] sm:$0xff]  ;;  %s559_s7 = smov [#allocation9]  }
  0x38   :  { %420 = vmatprep.subr.bf16.mxu1 %v556_v0  ;;  %393 = vmatprep.mubr.msk.f32.mxu1 %vm557_vm0, %v558_v1  ;;  %v397_v5 = vpack.c.bf16 %v67_v3, %v66_v2  ;;  %v400_v7 = vpack.c.bf16 %v69_v6, %v68_v4  ;;  %v70_v8 = vld [vmem:[#allocation6 + $0x20] sm:$0xff]  ;;  %v71_v9 = vld [vmem:[#allocation6 + $0x28] sm:$0xff]  ;;  %v72_v11 = vld [vmem:[#allocation6 + $0x30] sm:$0xff]  ;;  %s279_s8 = sshll.u32 %s559_s7, 4  ;;  %s280_s8 = int_to_ptr.vmem [resolvable:$true] %s279_s8 }
  0x39   :  { %v403_v10 = vpack.c.bf16 %v71_v9, %v70_v8  ;;  %v73_v12 = vld [vmem:[#allocation6 + $0x38] sm:$0xff]  ;;  %v74_v14 = vld [vmem:[#allocation6 + $0x40] sm:$0xff]  ;;  %v75_v15 = vld [vmem:[#allocation6 + $0x48] sm:$0xff]  ;;  %p528_p11 = scmp.lt.s32.totalorder %s280_s8, %s280_s8 }
  0x3a   :  { %398 = vmatpush3.bf16.msra.mxu0 %v397_v5  ;;  %v406_v13 = vpack.c.bf16 %v73_v12, %v72_v11  ;;  %v409_v16 = vpack.c.bf16 %v75_v15, %v74_v14  ;;  %v76_v17 = vld [vmem:[#allocation6 + $0x50] sm:$0xff]  ;;  %v77_v18 = vld [vmem:[#allocation6 + $0x58] sm:$0xff]  ;;  %v78_v20 = vld [vmem:[#allocation6 + $0x60] sm:$0xff] }
  0x3b   :  { %399 = vmatprep.subr.bf16.mxu0 %v556_v0  ;;  %v412_v19 = vpack.c.bf16 %v77_v18, %v76_v17  ;;  %v79_v21 = vld [vmem:[#allocation6 + $0x68] sm:$0xff]  ;;  %v80_v23 = vld [vmem:[#allocation6 + $0x70] sm:$0xff]  ;;  %v81_v24 = vld [vmem:[#allocation6 + $0x78] sm:$0xff] }
  0x3c   :  { %v415_v22 = vpack.c.bf16 %v79_v21, %v78_v20  ;;  %v418_v25 = vpack.c.bf16 %v81_v24, %v80_v23  ;;  %v65_v26 = vld [vmem:[#allocation3] sm:$0xff]  ;;  %v172_v27 = vld [vmem:[#allocation8] sm:$0xff]  ;;  %v173_v28 = vld [vmem:[#allocation8 + $0x8] sm:$0xff] }
  0x3d   :  { %v421_v29 = vpack.c.bf16 %v173_v28, %v172_v27  ;;  %v174_v30 = vld [vmem:[#allocation8 + $0x10] sm:$0xff]  ;;  %v175_v31 = vld [vmem:[#allocation8 + $0x18] sm:$0xff]  ;;  %v176_v33 = vld [vmem:[#allocation8 + $0x20] sm:$0xff] }
  0x3e   :  { %401 = vmatpush3.bf16.msra.mxu0 %v400_v7  ;;  %v424_v32 = vpack.c.bf16 %v175_v31, %v174_v30  ;;  %v177_v34 = vld [vmem:[#allocation8 + $0x28] sm:$0xff]  ;;  %v178_v36 = vld [vmem:[#allocation8 + $0x30] sm:$0xff]  ;;  %v179_v37 = vld [vmem:[#allocation8 + $0x38] sm:$0xff] }
  0x3f   :  { %402 = vmatprep.subr.bf16.mxu0 %v556_v0  ;;  %422 = vmatpush3.bf16.msra.mxu1 %v421_v29  ;;  %v427_v35 = vpack.c.bf16 %v177_v34, %v176_v33  ;;  %v430_v38 = vpack.c.bf16 %v179_v37, %v178_v36  ;;  %v180_v39 = vld [vmem:[#allocation8 + $0x40] sm:$0xff]  ;;  %v181_v40 = vld [vmem:[#allocation8 + $0x48] sm:$0xff]  ;;  %v182_v42 = vld [vmem:[#allocation8 + $0x50] sm:$0xff] }
  0x40   :  { %423 = vmatprep.subr.bf16.mxu1 %v556_v0  ;;  %v433_v41 = vpack.c.bf16 %v181_v40, %v180_v39  ;;  %v183_v43 = vld [vmem:[#allocation8 + $0x58] sm:$0xff]  ;;  %v184_v45 = vld [vmem:[#allocation8 + $0x60] sm:$0xff]  ;;  %v185_v46 = vld [vmem:[#allocation8 + $0x68] sm:$0xff] }
  0x41   :  { %v436_v44 = vpack.c.bf16 %v183_v43, %v182_v42  ;;  %v439_v47 = vpack.c.bf16 %v185_v46, %v184_v45  ;;  %v186_v48 = vld [vmem:[#allocation8 + $0x70] sm:$0xff]  ;;  %v187_v49 = vld [vmem:[#allocation8 + $0x78] sm:$0xff] }
  0x42   :  { %404 = vmatpush3.bf16.msra.mxu0 %v403_v10  ;;  %v442_v50 = vpack.c.bf16 %v187_v49, %v186_v48  ;;  %v290_v51 = vld [vmem:[%s668_s2] ss:$0 sm:$0xff]  ;;  %s523_s2 = scalar_lea.vmem %s280_s8, 128 }
  0x43   :  { %405 = vmatprep.subr.bf16.mxu0 %v556_v0  ;;  %425 = vmatpush3.bf16.msra.mxu1 %v424_v32  ;;  %v291_v62 = vld [vmem:[%s670_s4] ss:$0 sm:$0xff]  ;;  %p524_p10 = scmp.ne.s32.totalorder %s280_s8, %s523_s2  ;;  %p529_p12 = scmp.lt.s32.totalorder %s523_s2, %s523_s2 }
  0x44   :  { %426 = vmatprep.subr.bf16.mxu1 %v556_v0 }
  0x45   :  { %p530_p13 = por %p529_p12, %p528_p11 }
  0x46   :  { %407 = vmatpush3.bf16.msra.mxu0 %v406_v13 }
  0x47   :  { %408 = vmatprep.subr.bf16.mxu0 %v556_v0  ;;  %428 = vmatpush3.bf16.msra.mxu1 %v427_v35  ;;  %p531_p0 = pnand %p530_p13, %p524_p10 }
  0x48   :  { %429 = vmatprep.subr.bf16.mxu1 %v556_v0 }
  0x4a   :  { %410 = vmatpush3.bf16.msra.mxu0 %v409_v16 }
  0x4b   :  { %411 = vmatprep.subr.bf16.mxu0 %v556_v0  ;;  %431 = vmatpush3.bf16.msra.mxu1 %v430_v38 }
  0x4c   :  { %432 = vmatprep.subr.bf16.mxu1 %v556_v0 }
  0x4e   :  { %413 = vmatpush3.bf16.msra.mxu0 %v412_v19 }
  0x4f   :  { %414 = vmatprep.subr.bf16.mxu0 %v556_v0  ;;  %434 = vmatpush3.bf16.msra.mxu1 %v433_v41 }
  0x50   :  { %435 = vmatprep.subr.bf16.mxu1 %v556_v0 }
  0x52   :  { %416 = vmatpush3.bf16.msra.mxu0 %v415_v22 }
  0x53   :  { %417 = vmatprep.subr.bf16.mxu0 %v556_v0  ;;  %437 = vmatpush3.bf16.msra.mxu1 %v436_v44 }
  0x54   :  { %438 = vmatprep.subr.bf16.mxu1 %v556_v0 }
  0x56   :  { %419 = vmatpush3.bf16.msra.mxu0 %v418_v25 }
  0x57   :  { %440 = vmatpush3.bf16.msra.mxu1 %v439_v47 }
  0x58   :  { %441 = vmatprep.subr.bf16.mxu1 %v556_v0 }
  0x59   :  { %359 = vmatmul.mubr.f32.vlgmr.msra.gmra.mrb[0].mxu0 %v65_v26 }
  0x5b   :  { %443 = vmatpush3.bf16.msra.mxu1 %v442_v50 }
 0x12c   :  { %v155_v52 = vpop.f32.mrb[0].mxu0 }
 0x12d   :  { %v156_v53 = vadd.f32 %v290_v51, %v155_v52  ;;  %v360_v54 = vpop.f32.mrb[1].mxu0 }
 0x12f   :  { %v159_v55 = vsub.f32 0.0, %v156_v53 }
 0x131   :  { %v160_v56 = vmul.f32 1.442695, %v159_v55 }
 0x133   :  { %453 = vpow2.f32 %v160_v56 }
 0x13d   :  { %v454_v57 = vpop.eup %453 }
 0x13e   :  { %v162_v58 = vadd.f32 1.0, %v454_v57 }
 0x140   :  { %455 = vrcp.f32 %v162_v58 }
 0x14a   :  { %v456_v59 = vpop.eup %455 }
 0x14b   :  { %v164_v60 = vmul.f32 %v456_v59, %v156_v53 }
 0x14d   :  { %v170_v61 = vmul.f32 %v164_v60, %v65_v26 }
 0x14f   :  { %394 = vmatmul.mubr.f32.vlgmr.msra.gmra.mrb[0].mxu1 %v170_v61 }
 0x222   :  { %v254_v63 = vpop.f32.mrb[0].mxu1 }
 0x223   :  { %v271_v0 = vadd.f32 %v291_v62, %v254_v63  ;;  %v395_v1 = vpop.f32.mrb[1].mxu1 }
 0x225   :  { %272 = vst [vmem:[#allocation9] sm:$0xff] %v271_v0 }
 0x226   :  { %534 = shalt.err (!%p531_p0)
}
 0x227   :  { %s535_s11 = scalar_lea.hbm %s671_s5, 128 }
 0x228   :  { %p536_p1 = scmp.ne.s32.totalorder %s671_s5, %s535_s11  ;;  %p539_p2 = scmp.lt.u32.totalorder %s535_s11, %s671_s5 }
 0x22a   :  { %p541_p3 = pnand %p539_p2, %p536_p1 }
 0x22c   :  { %544 = shalt.err (!%p541_p3)
}
 0x22d   :  { %282 = dma.vmem_to_hbm [thread:$0]  %s280_s8, 128, %s671_s5, [#allocation5]  }
 0x22e   :  { %549 = dma.done.wait [#allocation5], 128  }
 0x22f   :  { %550 = vsyncadd [#allocation5], 4294967168 }
 0x230   :  { %286 = vsyncpa [#allocation4], 1 }
 0x231   :  { %287 = vsyncpa [#allocation7], 1 }
 0x232   :  { %288 = vsyncpa [#allocation5], 1 }

</bundles_post_ra>
